<compile_context>
chip_gen: v7x
topology: tpu7x:2x2x1
jax: 0.10.0
libtpu: 0.0.40
codegen_flags: <defaults>
</compile_context>

<pallas_src>
import functools
import math

import jax
import jax.numpy as jnp
from jax.experimental import pallas as pl
from jax.experimental.pallas import tpu as pltpu

_LOG_CLAMP = math.log(1e-8)  # log-domain equivalent of p.clamp(min=1e-8)


def _round_up(x, m):
    return -(-x // m) * m


def _int_pow(v, n):
    """v**n for a small non-negative Python int n via repeated VPU multiplies."""
    if n == 0:
        return jnp.ones_like(v)
    result = None
    base = v
    while n:
        if n & 1:
            result = base if result is None else result * base
        n >>= 1
        if n:
            base = base * base
    return result


def _focal_loss_kernel(y_pred_ref, y_true_ref, w_p_ref, out_ref, *, gamma, int_gamma):
    # Cast in-kernel (cheap VPU work); HBM traffic stays in the native dtype.
    x = y_pred_ref[...].astype(jnp.float32)
    y = y_true_ref[...].astype(jnp.float32)
    w_p = w_p_ref[...]  # [1, block_c] f32 -> broadcasts over the batch tile

    # Stable log-sigmoid identities (2 EUP ops instead of sigmoid + 2 logs):
    #   log p     = min(x, 0) - log(1 + exp(-|x|))   (no overflow for any x)
    #   log (1-p) = log p - x
    e = jnp.exp(-jnp.abs(x))           # EUP exp
    log1pe = jnp.log(1.0 + e)          # EUP log
    log_p_raw = jnp.minimum(x, 0.0) - log1pe
    log_1mp_raw = log_p_raw - x

    # torch .clamp(min=1e-8) applied in log domain: cheap VPU max.
    log_p = jnp.maximum(log_p_raw, _LOG_CLAMP)
    log_1mp = jnp.maximum(log_1mp_raw, _LOG_CLAMP)

    if int_gamma is not None:
        # Integer-gamma fast path: powers via repeated multiplies on the VPU.
        inv = 1.0 / (1.0 + e)                     # exact reciprocal
        p = jnp.where(x >= 0.0, inv, e * inv)     # sigmoid(x)
        one_m_p = 1.0 - p                         # single VPU sub (matches torch)
        pow_1mp = _int_pow(one_m_p, int_gamma)
        pow_p = _int_pow(p, int_gamma)
    else:
        # General gamma: p**g = exp(g * log p), derived from the UNCLAMPED logs
        # so the power term matches torch's p**gamma (clamp only guards log).
        pow_1mp = jnp.exp(gamma * log_1mp_raw)
        pow_p = jnp.exp(gamma * log_p_raw)

    out = -w_p * pow_1mp * y * log_p - pow_p * (1.0 - y) * log_1mp
    out_ref[...] = out.astype(out_ref.dtype)


def focal_loss(y_pred, y_true, w_p, gamma, *, target_tile_elems=256 * 1024):
    """Elementwise focal loss.

    y_pred / y_true: [B, C] in any float (or label) dtype — they are widened to
    f32 inside the kernel, so pass the narrowest dtype you have (bytes/elem is
    the roofline).  w_p: [C] or [1, C].  Output has y_pred's dtype.
    """
    B, C = y_pred.shape
    assert y_true.shape == (B, C)
    out_dtype = y_pred.dtype

    g = float(gamma)
    int_gamma = int(g) if (g == int(g) and 0 <= g <= 16) else None
    kernel = functools.partial(_focal_loss_kernel, gamma=g, int_gamma=int_gamma)

    w_p1d = jnp.reshape(w_p, (C,)).astype(jnp.float32)

    # ---- Lane-densify: if C is not a multiple of 128 but B folds cleanly,
    # fuse `fold` consecutive rows into one so the lane dim becomes a multiple
    # of 128 (unmasked vst, no idle lanes).  Row-major reshape is free; the
    # pos_weight row is just tiled `fold` times (tiny, C-length).
    fold = 1
    if C % 128 != 0:
        f = 128 // math.gcd(C, 128)
        if B % f == 0 and B >= f:
            fold = f
    if fold > 1:
        Bk, Ck = B // fold, C * fold
        yp = y_pred.reshape(Bk, Ck)
        yt = y_true.reshape(Bk, Ck)
        w_row = jnp.tile(w_p1d, fold).reshape(1, Ck)
    else:
        Bk, Ck = B, C
        yp, yt = y_pred, y_true
        w_row = w_p1d.reshape(1, C)

    # ---- Sublane alignment required by the narrowest tiled dtype
    # (f32 -> 8, bf16 -> 16, int8/bool -> 32).
    row_align = max(32 // jnp.dtype(d).itemsize for d in (yp.dtype, yt.dtype, out_dtype))

    # ---- Channel tiling: only tile C when a full-C block would blow the
    # ~1 MiB streamed-tile target even at the minimum row count.  Keeps the
    # double-buffered footprint (~6-8 MiB) inside every generation's scoped
    # VMEM default, including v7x's 64 MiB physical VMEM.
    full_c_limit = max(128, target_tile_elems // row_align)
    if Ck <= full_c_limit:
        block_c = Ck
    else:
        block_c = max(128, (full_c_limit // 128) * 128)
    grid_c = pl.cdiv(Ck, block_c)

    # ---- Row tiling: ~target_tile_elems per streamed tile, but (best effort)
    # guarantee a multi-step grid so the "parallel" axes can be sharded across
    # both TensorCores on 2-TC parts (v7x).  Harmless on 1-TC parts: per-step
    # overhead (~0.35 us) is negligible at these tile sizes.
    rows_target = max(row_align,
                      ((target_tile_elems // block_c) // row_align) * row_align)
    MIN_GRID_STEPS = 4
    if grid_c < MIN_GRID_STEPS:
        want_r = -(-MIN_GRID_STEPS // grid_c)
        rows_cap = max(row_align, _round_up(-(-Bk // want_r), row_align))
        rows_target = min(rows_target, rows_cap)
    block_rows = Bk if rows_target >= Bk else rows_target
    grid_r = pl.cdiv(Bk, block_rows)

    # Ragged last blocks (Bk % block_rows != 0 or Ck % block_c != 0) are handled
    # by Pallas: padded reads, masked writes.  No wrapper-side jnp.pad or output
    # slice, so HBM sees exactly one pass per array.
    out = pl.pallas_call(
        kernel,
        out_shape=jax.ShapeDtypeStruct((Bk, Ck), out_dtype),
        grid_spec=pltpu.PrefetchScalarGridSpec(
            num_scalar_prefetch=0,
            grid=(grid_r, grid_c),
            in_specs=[
                pl.BlockSpec((block_rows, block_c), lambda i, j: (i, j)),
                pl.BlockSpec((block_rows, block_c), lambda i, j: (i, j)),
                pl.BlockSpec((1, block_c), lambda i, j: (0, j)),  # broadcast pos_weight
            ],
            out_specs=pl.BlockSpec((block_rows, block_c), lambda i, j: (i, j)),
        ),
        compiler_params=pltpu.CompilerParams(
            dimension_semantics=("parallel", "parallel"),
        ),
    )(yp, yt, w_row)

    return out.reshape(B, C) if fold > 1 else out


def focal_loss_ref(y_pred, y_true, w_p, gamma):
    """Pure-JAX reference mirroring the PyTorch forward literally."""
    p = jax.nn.sigmoid(y_pred.astype(jnp.float32))
    w_p = jnp.reshape(w_p, (1, -1)).astype(jnp.float32)
    y = y_true.astype(jnp.float32)
    pos = -w_p * (1.0 - p) ** gamma * y * jnp.log(jnp.maximum(p, 1e-8))
    neg = -(p ** gamma) * (1.0 - y) * jnp.log(jnp.maximum(1.0 - p, 1e-8))
    return pos + neg


if __name__ == "__main__":
    key = jax.random.PRNGKey(0)

    # (B, C, gamma, logits dtype, labels dtype)
    configs = [
        (20, 256, 2.0, jnp.float32, jnp.float32),    # int gamma, multi-step grid + ragged last block
        (10, 96, 1.7, jnp.float32, jnp.float32),     # general gamma, lane-sparse fallback (no fold)
        (12, 96, 2.0, jnp.bfloat16, jnp.bfloat16),   # bf16 I/O, row-fold lane-densify path
    ]
    for (B, C, gamma, pdt, ldt) in configs:
        k1, k2, k3 = jax.random.split(jax.random.fold_in(key, B * 1000 + C), 3)
        y_pred = (jax.random.normal(k1, (B, C), dtype=jnp.float32) * 1.5).astype(pdt)  # logits
        y_true = (jax.random.uniform(k2, (B, C)) > 0.5).astype(ldt)
        w_p = 0.5 + jax.random.uniform(k3, (C,), dtype=jnp.float32)                    # pos_weight

        out = jax.block_until_ready(focal_loss(y_pred, y_true, w_p, gamma))
        ref = focal_loss_ref(y_pred, y_true, w_p, gamma).astype(pdt)

        tol = 5e-4 if pdt == jnp.float32 else 2e-2
        assert out.shape == (B, C)
        assert jnp.allclose(out.astype(jnp.float32), ref.astype(jnp.float32),
                            atol=tol, rtol=tol), (
            f"mismatch vs reference (B={B}, C={C}, gamma={gamma}, dtype={pdt})")

    print("KERNEL_OK")
</pallas_src>

<mosaic_0001>
module attributes {stable_mosaic.version = 11 : i64} {
  func.func @_focal_loss_kernel(%arg0: i32, %arg1: i32, %arg2: memref<8x256xf32, #tpu.memory_space<vmem>>, %arg3: memref<8x256xf32, #tpu.memory_space<vmem>>, %arg4: memref<1x256xf32, #tpu.memory_space<vmem>>, %arg5: memref<8x256xf32, #tpu.memory_space<vmem>>) attributes {dimension_semantics = [#tpu.dimension_semantics<parallel>, #tpu.dimension_semantics<parallel>], iteration_bounds = array<i64: 3, 1>, scalar_prefetch = 0 : i64, scratch_operands = 0 : i64, tpu.core_type = #tpu.core_type<tc>, window_params = [{transform_indices = @transform_0, window_bounds = array<i64: 8, 256>}, {transform_indices = @transform_1, window_bounds = array<i64: 8, 256>}, {transform_indices = @transform_2, window_bounds = array<i64: 1, 256>}, {transform_indices = @transform_3, window_bounds = array<i64: 8, 256>}]} {
    %c0 = arith.constant 0 : index
    %c0_0 = arith.constant 0 : index
    %0 = vector.load %arg2[%c0, %c0_0] : memref<8x256xf32, #tpu.memory_space<vmem>>, vector<8x256xf32>
    %c0_1 = arith.constant 0 : index
    %c0_2 = arith.constant 0 : index
    %1 = vector.load %arg3[%c0_1, %c0_2] : memref<8x256xf32, #tpu.memory_space<vmem>>, vector<8x256xf32>
    %c0_3 = arith.constant 0 : index
    %c0_4 = arith.constant 0 : index
    %2 = vector.load %arg4[%c0_3, %c0_4] : memref<1x256xf32, #tpu.memory_space<vmem>>, vector<1x256xf32>
    %3 = math.absf %0 : vector<8x256xf32>
    %cst = arith.constant 0.000000e+00 : f32
    %4 = vector.broadcast %cst : f32 to vector<8x256xf32>
    %5 = arith.subf %4, %3 : vector<8x256xf32>
    %6 = math.exp %5 : vector<8x256xf32>
    %cst_5 = arith.constant 1.000000e+00 : f32
    %7 = vector.broadcast %cst_5 : f32 to vector<8x256xf32>
    %8 = arith.addf %7, %6 : vector<8x256xf32>
    %9 = math.log %8 : vector<8x256xf32>
    %cst_6 = arith.constant 0.000000e+00 : f32
    %10 = vector.broadcast %cst_6 : f32 to vector<8x256xf32>
    %11 = arith.minimumf %0, %10 : vector<8x256xf32>
    %12 = arith.subf %11, %9 : vector<8x256xf32>
    %13 = arith.subf %12, %0 : vector<8x256xf32>
    %cst_7 = arith.constant -18.420681 : f32
    %14 = vector.broadcast %cst_7 : f32 to vector<8x256xf32>
    %15 = arith.maximumf %12, %14 : vector<8x256xf32>
    %cst_8 = arith.constant -18.420681 : f32
    %16 = vector.broadcast %cst_8 : f32 to vector<8x256xf32>
    %17 = arith.maximumf %13, %16 : vector<8x256xf32>
    %cst_9 = arith.constant 1.000000e+00 : f32
    %18 = vector.broadcast %cst_9 : f32 to vector<8x256xf32>
    %19 = arith.addf %18, %6 : vector<8x256xf32>
    %cst_10 = arith.constant 1.000000e+00 : f32
    %20 = vector.broadcast %cst_10 : f32 to vector<8x256xf32>
    %21 = arith.divf %20, %19 : vector<8x256xf32>
    %cst_11 = arith.constant 0.000000e+00 : f32
    %22 = vector.broadcast %cst_11 : f32 to vector<8x256xf32>
    %23 = arith.cmpf oge, %0, %22 : vector<8x256xf32>
    %24 = arith.mulf %6, %21 : vector<8x256xf32>
    %25 = arith.select %23, %21, %24 : vector<8x256xi1>, vector<8x256xf32>
    %cst_12 = arith.constant 1.000000e+00 : f32
    %26 = vector.broadcast %cst_12 : f32 to vector<8x256xf32>
    %27 = arith.subf %26, %25 : vector<8x256xf32>
    %28 = arith.mulf %27, %27 : vector<8x256xf32>
    %29 = arith.mulf %25, %25 : vector<8x256xf32>
    %cst_13 = arith.constant 0.000000e+00 : f32
    %30 = vector.broadcast %cst_13 : f32 to vector<1x256xf32>
    %31 = arith.subf %30, %2 : vector<1x256xf32>
    %32 = vector.broadcast %31 : vector<1x256xf32> to vector<8x256xf32>
    %33 = arith.mulf %32, %28 : vector<8x256xf32>
    %34 = arith.mulf %33, %1 : vector<8x256xf32>
    %35 = arith.mulf %34, %15 : vector<8x256xf32>
    %cst_14 = arith.constant 1.000000e+00 : f32
    %36 = vector.broadcast %cst_14 : f32 to vector<8x256xf32>
    %37 = arith.subf %36, %1 : vector<8x256xf32>
    %38 = arith.mulf %29, %37 : vector<8x256xf32>
    %39 = arith.mulf %38, %17 : vector<8x256xf32>
    %40 = arith.subf %35, %39 : vector<8x256xf32>
    %c0_15 = arith.constant 0 : index
    %c0_16 = arith.constant 0 : index
    %41 = vector.load %arg5[%c0_15, %c0_16] : memref<8x256xf32, #tpu.memory_space<vmem>>, vector<8x256xf32>
    tpu.vector_store %arg5[%c0_15, %c0_16], %40 {strides = array<i32>} : memref<8x256xf32, #tpu.memory_space<vmem>>, vector<8x256xf32>,
    return
  }
  func.func @transform_0(%arg0: i32, %arg1: i32) -> (i32, i32) {
    %c0_i32 = arith.constant 0 : i32
    return %arg0, %arg1 : i32, i32
  }
  func.func @transform_1(%arg0: i32, %arg1: i32) -> (i32, i32) {
    %c0_i32 = arith.constant 0 : i32
    return %arg0, %arg1 : i32, i32
  }
  func.func @transform_2(%arg0: i32, %arg1: i32) -> (i32, i32) {
    %c0_i32 = arith.constant 0 : i32
    %c0_i32_0 = arith.constant 0 : i32
    return %c0_i32, %arg1 : i32, i32
  }
  func.func @transform_3(%arg0: i32, %arg1: i32) -> (i32, i32) {
    %c0_i32 = arith.constant 0 : i32
    return %arg0, %arg1 : i32, i32
  }
}

</mosaic_0001>

<bundles_post_ra>
// kernel: tpu_custom_call.1
= control target key start
LH: loop header
LB: loop body
LE: loop exit
PB: predicated region body
PF: predicated region fallthrough
CT: control target
= control target key end

     0   :  { %8 = vsyncpa [#allocation3], 0  ;;  %s984_s0 = inlined_call_operand.hbm [shape: f32[20,256], index: 0, kind: input, shape index: {}]   ;;  %s985_s1 = inlined_call_operand.hbm [shape: f32[20,256], index: 1, kind: input, shape index: {}]   ;;  %s986_s2 = inlined_call_operand.vmem [shape: f32[1,256], index: 2, kind: input, shape index: {}]   ;;  %s987_s3 = inlined_call_operand.hbm [shape: f32[20,256], index: 3, kind: output, shape index: {}]  }
   0x1   :  { %10 = vsyncpa [#allocation3 + $0x1], 0 }
   0x2   :  { %11 = vsyncpa [#allocation6], 0 }
   0x3   :  { %13 = vsyncpa [#allocation6 + $0x1], 0 }
   0x4   :  { %14 = vsyncpa [#allocation4], 0 }
   0x5   :  { %16 = vsyncpa [#allocation4 + $0x1], 0  ;;  %s754_s12 = smov 0   ;;  %s756_s13 = smov 0  }
   0x6   :  { %s758_s14 = smov 0   ;;  %s760_s15 = smov 0  }
   0x7   :  { %s762_s16 = smov 0   ;;  %s764_s17 = smov 0  }
   0x8 LB: > { %s481_s18 = sadd.s32 4294967295, %s729_s17   ;;  %s482_s19 = sadd.s32 4294967294, %s729_s17   ;;  %s729_s17 = sphi %s764_s17, %s22_s17   ;;  %s725_s16 = sphi %s762_s16, %s1006_s16   ;;  %s721_s15 = sphi %s760_s15, %s1005_s15   ;;  %s717_s14 = sphi %s758_s14, %s1004_s14   ;;  %s713_s13 = sphi %s756_s13, %s1003_s13   ;;  %s709_s12 = sphi %s754_s12, %s1002_s12  }
   0x9   : > { %s34_s20 = sadd.s32 1, %s725_s16  ;;  %s43_s21 = sadd.s32 1, %s717_s14 }
   0xa   : > { %p36_p0 = scmp.ge.s32.totalorder %s34_s20, 3  ;;  %p50_p1 = scmp.ne.s32.totalorder %s717_s14, %s713_s13 }
   0xb   : > { %p51_p2 = scmp.eq.s32.totalorder %s729_s17, 0  ;;  %p56_p3 = scmp.ne.s32.totalorder %s713_s13, %s709_s12 }
   0xc   : > { %s1008_s20 = smov (%p36_p0, %s34_s20), 0  ;;  %p57_p5 = scmp.eq.s32.totalorder %s481_s18, 0 }
   0xd   : > { %p795_p4 = por %p51_p2, %p50_p1  ;;  %s38_s23 = ssub.s32 %s725_s16, %s1008_s20 }
   0xe   : > { %p136_p6 = scmp.eq.s32.totalorder %s481_s18, 2  ;;  %p41_p7 = scmp.eq.s32.totalorder %s38_s23, 0 }
   0xf   : > { %p801_p8 = por %p57_p5, %p56_p3  ;;  %p142_p10 = scmp.eq.s32.totalorder %s482_s19, 2 }
  0x10   : > { %p805_p9 = por %p136_p6, %p50_p1  ;;  %p521_p12 = scmp.lt.s32.totalorder %s729_s17, 3 }
  0x11   : > { %s991_s24 = scalar_select %p801_p8, 1, 0 }
  0x12   : > { %s992_s25 = scalar_select %p805_p9, 1, 0 }
  0x13   : > { %s810_s26 = scalar_select %p41_p7, %s717_s14, %s43_s21  }
  0x14   : > { %p812_p11 = por %p142_p10, %p56_p3  ;;  %s818_s28 = sand.u32 1, %s717_s14  }
  0x15   : > { %s486_s29 = sshll.u32 %s818_s28, 4  ;;  %s501_s30 = sshll.u32 %s725_s16, 8 }
  0x16   : > { %s993_s27 = scalar_select %p812_p11, 1, 0 }
  0x17   : > { %s827_s6 = scalar_lea.hbm %s984_s0, %s501_s30  ;;  %s174_s7 = scalar_lea.vmem [#allocation2], %s486_s29 }
  0x18   : > { %s184_s8 = sshll.u32 %s174_s7, 4  ;;  %p835_p13 = pnand %p521_p12, %p795_p4  ;;  %s831_s8 = int_to_ptr.vmem [resolvable:$true] %s184_s8 }
  0x19   : > { %s171_s10 = scalar_lea.sflag [#allocation3], %s818_s28  ;;  %s583_s11 = scalar_lea.hbm %s827_s6, 256 }
  0x1a   : > { %p584_p2 = scmp.ne.s32.totalorder %s827_s6, %s583_s11  ;;  %p585_p3 = pneg %p835_p13 }
  0x1b   : > { %s588_s21 = scalar_lea.hbm %s984_s0, 768  ;;  %p589_p4 = scmp.lt.u32.totalorder %s827_s6, %s984_s0 }
  0x1c   : > { %p586_p5 = pnand %p585_p3, %p584_p2  ;;  %p590_p7 = scmp.lt.u32.totalorder %s588_s21, %s583_s11 }
  0x1d   : > { %p592_p12 = scmp.lt.u32.totalorder %s583_s11, %s827_s6 }
  0x1e   : > { %p587_p6 = pneg %p586_p5  ;;  %p591_p10 = por %p590_p7, %p589_p4 }
  0x20   : > { %p593_p0 = por %p592_p12, %p591_p10 }
  0x22   : > { %p594_p1 = pnand %p593_p0, %p587_p6 }
  0x24   : > { %597 = shalt.err (!%p594_p1)
}
  0x25   : > { %s598_s4 = scalar_lea.vmem %s831_s8, 256  ;;  %s731_s5 = smov [#allocation2]  }
  0x26   : > { %p599_p2 = scmp.ne.s32.totalorder %s831_s8, %s598_s4  ;;  %s603_s7 = sshll.u32 %s731_s5, 4  ;;  %s604_s7 = int_to_ptr.vmem [resolvable:$false] %s603_s7 }
  0x27   : > { %s605_s18 = scalar_lea.vmem %s604_s7, 512  ;;  %p606_p9 = scmp.lt.s32.totalorder %s831_s8, %s604_s7 }
  0x28   : > { %p601_p5 = pnand %p599_p2, %p585_p3  ;;  %p607_p4 = scmp.lt.s32.totalorder %s605_s18, %s598_s4 }
  0x2a   : > { %p602_p11 = pneg %p601_p5  ;;  %p608_p7 = por %p607_p4, %p606_p9 }
  0x2c   : > { %p609_p10 = pnand %p608_p7, %p602_p11 }
  0x2e   : > { %612 = shalt.err (!%p609_p10)
}
  0x2f   : > { %513 = dma.hbm_to_vmem [thread:$0]  (!%p835_p13), %s827_s6, 256, %s831_s8, %s171_s10  }
  0x30   : > { %p995_p0 = scmp.lt.s32.totalorder %s729_s17, 4  ;;  %p996_p1 = scmp.ge.s32.totalorder %s729_s17, 1 }
  0x31   : > { %s880_s22 = scalar_lea.hbm %s985_s1, %s501_s30  ;;  %s195_s23 = scalar_lea.vmem [#allocation5], %s486_s29 }
  0x32   : > { %p871_p6 = pnand %p996_p1, %p995_p0  ;;  %s205_s4 = sshll.u32 %s195_s23, 4  ;;  %s206_s4 = int_to_ptr.vmem [resolvable:$true] %s205_s4 }
  0x33   : > { %s192_s6 = scalar_lea.sflag [#allocation6], %s818_s28  ;;  %s613_s8 = scalar_lea.hbm %s880_s22, 256 }
  0x34   : > { %s997_s11 = scalar_select %p871_p6, 1, 0 }
  0x35   : > { %p614_p9 = scmp.ne.s32.totalorder %s880_s22, %s613_s8  ;;  %s618_s30 = scalar_lea.hbm %s985_s1, 768 }
  0x36   : > { %p619_p2 = scmp.lt.u32.totalorder %s880_s22, %s985_s1  ;;  %p620_p5 = scmp.lt.u32.totalorder %s618_s30, %s613_s8 }
  0x37   : > { %p616_p11 = pnand %p614_p9, %p585_p3  ;;  %p622_p7 = scmp.lt.u32.totalorder %s613_s8, %s880_s22 }
  0x38   : > { %p621_p4 = por %p620_p5, %p619_p2 }
  0x39   : > { %p617_p12 = pneg %p616_p11 }
  0x3a   : > { %p623_p10 = por %p622_p7, %p621_p4 }
  0x3c   : > { %p624_p0 = pnand %p623_p10, %p617_p12 }
  0x3e   : > { %627 = shalt.err (!%p624_p0)
}
  0x3f   : > { %s628_s28 = scalar_lea.vmem %s206_s4, 256  ;;  %s732_s29 = smov [#allocation5]  }
  0x40   : > { %p629_p1 = scmp.ne.s32.totalorder %s206_s4, %s628_s28  ;;  %s633_s19 = sshll.u32 %s732_s29, 4  ;;  %s634_s19 = int_to_ptr.vmem [resolvable:$false] %s633_s19 }
  0x41   : > { %s635_s21 = scalar_lea.vmem %s634_s19, 512  ;;  %p636_p8 = scmp.lt.s32.totalorder %s206_s4, %s634_s19 }
  0x42   : > { %p631_p9 = pnand %p629_p1, %p585_p3  ;;  %p637_p6 = scmp.lt.s32.totalorder %s635_s21, %s628_s28 }
  0x44   : > { %p632_p11 = pneg %p631_p9  ;;  %p638_p2 = por %p637_p6, %p636_p8 }
  0x46   : > { %p639_p5 = pnand %p638_p2, %p632_p11 }
  0x48   : > { %642 = shalt.err (!%p639_p5)
}
  0x49   : > { %516 = dma.hbm_to_vmem [thread:$0]  (!%p835_p13), %s880_s22, 256, %s206_s4, %s192_s6  }
  0x4a   : > { %p998_p12 = scmp.ne.s32.totalorder %s997_s11, 0 }
  0x4b   : > { %s907_s23 = sand.u32 (!%p998_p12), 1, %s713_s13   ;;  %p999_p8 = scmp.ne.s32.totalorder (!%p998_p12), %s991_s24, 0 }
  0x4c   : > { %214 = sbr.rel (%p998_p12) target bundleno = 149 (0x95), region = 32  ;;  %s910_s8 = sshll.u32 (!%p998_p12), %s907_s23, 4 }
  0x4d   : > { %s217_s10 = scalar_lea.sflag (!%p998_p12), [#allocation3], %s907_s23  ;;  %s220_s5 = scalar_lea.vmem (!%p998_p12), [#allocation2], %s910_s8 }
  0x53   : > { %696 = dma.done.wait (%p999_p8), %s217_s10, 256  }
  0x54   : > { %698 = vsyncadd (%p999_p8), %s217_s10, 4294967040  ;;  %s226_s9 = scalar_lea.sflag [#allocation6], %s907_s23  ;;  %s229_s11 = scalar_lea.vmem [#allocation5], %s910_s8 }
  0x55   : > { %700 = dma.done.wait (%p999_p8), %s226_s9, 256  }
  0x56   : > { %702 = vsyncadd (%p999_p8), %s226_s9, 4294967040  ;;  %v269_v0 = vld [vmem:[%s220_s5] sm:$0xff]  ;;  %v270_v2 = vld [vmem:[%s220_s5 + $0x8] sm:$0xff]  ;;  %v316_v12 = vlaneseq  ;;  %s260_s4 = scalar_lea.vmem [#allocation7], %s910_s8  ;;  %s503_s30 = sshll.u32 %s721_s15, 8 }
  0x57   : > { %v274_v1 = vand.u32 2147483647, %v269_v0  ;;  %v275_v3 = vand.u32 2147483647, %v270_v2  ;;  %v273_v14 = vld [vmem:[%s986_s2] sm:$0x3]  ;;  %s938_s28 = scalar_lea.hbm %s987_s3, %s503_s30 }
  0x58   : > { %v317_v13 = vshrl.u32 %v316_v12, 7  ;;  %v288_v15 = vmin.f32 %v269_v0, 0.0  ;;  %v271_v17 = vld [vmem:[%s229_s11] sm:$0xff]  ;;  %vm302_vm0 = vcmp.ge.f32.partialorder %v269_v0, 0.0  ;;  %v314_v20 = vsub.f32 0.0, %v273_v14  ;;  %v272_v29 = vld [vmem:[%s229_s11 + $0x8] sm:$0xff] }
  0x59   : > { %v276_v4 = vsub.f32 0.0, %v274_v1  ;;  %v277_v5 = vsub.f32 0.0, %v275_v3  ;;  %v289_v24 = vmin.f32 %v270_v2, 0.0  ;;  %v332_v28 = vsub.f32 1.0, %v271_v17  ;;  %s359_s6 = sshll.u32 %s260_s4, 4  ;;  %s343_s29 = scalar_lea.sflag [#allocation4], %s907_s23  ;;  %s933_s6 = int_to_ptr.vmem [resolvable:$true] %s359_s6 }
  0x5a   : > { %v318_v21 = vsub.s32 0, %v317_v13  ;;  %v322_v25 = vsub.s32 1, %v317_v13  ;;  %vm303_vm1 = vcmp.ge.f32.partialorder %v270_v2, 0.0  ;;  %v333_v40 = vsub.f32 1.0, %v272_v29  ;;  %s643_s19 = scalar_lea.vmem %s933_s6, 256  ;;  %p1000_p3 = scmp.ne.s32.totalorder %s992_s25, 0 }
  0x5b   : > { %v278_v6 = vmul.f32 1.442695, %v276_v4  ;;  %v280_v7 = vmul.f32 1.442695, %v277_v5  ;;  %p644_p13 = scmp.ne.s32.totalorder %s933_s6, %s643_s19  ;;  %s733_s15 = smov [#allocation7]  }
  0x5c   : > { %v319_v36 = vrot.slane %v314_v20, %v318_v21  ;;  %v323_v39 = vrot.slane %v314_v20, %v322_v25  ;;  %s647_s21 = sshll.u32 %s733_s15, 4  ;;  %s648_s21 = int_to_ptr.vmem [resolvable:$false] %s647_s21 }
  0x5d   : > { %571 = vpow2.f32 %v278_v6  ;;  %p645_p6 = pnand %p644_p13, %p1000_p3  ;;  %s649_s8 = scalar_lea.vmem %s648_s21, 512 }
  0x5e   : > { %573 = vpow2.f32 %v280_v7  ;;  %p650_p7 = scmp.lt.s32.totalorder %s933_s6, %s648_s21  ;;  %p651_p10 = scmp.lt.s32.totalorder %s649_s8, %s643_s19 }
  0x5f   : > { %p646_p4 = pneg %p645_p6 }
  0x60   : > { %p652_p0 = por %p651_p10, %p650_p7 }
  0x62   : > { %p653_p1 = pnand %p652_p0, %p646_p4 }
  0x67   : > { %v572_v8 = vpop.eup %571 }
  0x68   : > { %v574_v9 = vpop.eup %573  ;;  %v282_v10 = vadd.f32 1.0, %v572_v8 }
  0x69   : > { %v283_v11 = vadd.f32 1.0, %v574_v9 }
  0x6a   : > { %575 = vlog2.f32 %v282_v10 }
  0x6b   : > { %577 = vrcp.f32 %v282_v10 }
  0x6c   : > { %579 = vlog2.f32 %v283_v11 }
  0x6d   : > { %581 = vrcp.f32 %v283_v11 }
  0x74   : > { %v576_v16 = vpop.eup %575 }
  0x75   : > { %v578_v18 = vpop.eup %577  ;;  %v285_v19 = vmul.f32 0.6931472, %v576_v16 }
  0x76   : > { %v580_v22 = vpop.eup %579  ;;  %v304_v23 = vmul.f32 %v578_v18, %v572_v8 }
  0x77   : > { %v582_v26 = vpop.eup %581  ;;  %v290_v27 = vsub.f32 %v288_v15, %v285_v19  ;;  %v287_v30 = vmul.f32 0.6931472, %v580_v22 }
  0x78   : > { %v306_v31 = vsel %vm302_vm0, %v578_v18, %v304_v23  ;;  %v305_v32 = vmul.f32 %v582_v26, %v574_v9 }
  0x79   : > { %v292_v33 = vsub.f32 %v290_v27, %v269_v0  ;;  %v308_v34 = vsub.f32 1.0, %v306_v31  ;;  %v312_v35 = vmul.f32 %v306_v31, %v306_v31  ;;  %v291_v37 = vsub.f32 %v289_v24, %v287_v30 }
  0x7a   : > { %v307_v38 = vsel %vm303_vm1, %v582_v26, %v305_v32  ;;  %v294_v47 = vmax.f32 %v290_v27, -18.420681 }
  0x7b   : > { %v296_v41 = vmax.f32 %v292_v33, -18.420681  ;;  %v310_v42 = vmul.f32 %v308_v34, %v308_v34  ;;  %v334_v43 = vmul.f32 %v332_v28, %v312_v35  ;;  %v309_v44 = vsub.f32 1.0, %v307_v38 }
  0x7c   : > { %v293_v45 = vsub.f32 %v291_v37, %v270_v2  ;;  %v313_v46 = vmul.f32 %v307_v38, %v307_v38  ;;  %v295_v54 = vmax.f32 %v291_v37, -18.420681 }
  0x7d   : > { %v326_v48 = vmul.f32 %v319_v36, %v310_v42  ;;  %v311_v49 = vmul.f32 %v309_v44, %v309_v44  ;;  %v336_v53 = vmul.f32 %v334_v43, %v296_v41 }
  0x7e   : > { %v297_v50 = vmax.f32 %v293_v45, -18.420681  ;;  %v335_v51 = vmul.f32 %v333_v40, %v313_v46 }
  0x7f   : > { %v328_v52 = vmul.f32 %v326_v48, %v271_v17  ;;  %v327_v55 = vmul.f32 %v323_v39, %v311_v49 }
  0x80   : > { %v337_v58 = vmul.f32 %v335_v51, %v297_v50 }
  0x81   : > { %v330_v56 = vmul.f32 %v328_v52, %v294_v47  ;;  %v329_v57 = vmul.f32 %v327_v55, %v272_v29 }
  0x83   : > { %v338_v59 = vsub.f32 %v330_v56, %v336_v53  ;;  %v331_v60 = vmul.f32 %v329_v57, %v295_v54 }
  0x85   : > { %340 = vst [vmem:[%s260_s4] sm:$0xff] %v338_v59  ;;  %v339_v61 = vsub.f32 %v331_v60, %v337_v58 }
  0x87   : > { %341 = vst [vmem:[%s260_s4 + $0x8] sm:$0xff] %v339_v61 }
  0x88   : > { %656 = shalt.err (!%p653_p1)
}
  0x89   : > { %s657_s23 = scalar_lea.hbm %s938_s28, 256  ;;  %s661_s9 = scalar_lea.hbm %s987_s3, 768 }
  0x8a   : > { %p658_p9 = scmp.ne.s32.totalorder %s938_s28, %s657_s23  ;;  %p662_p5 = scmp.lt.u32.totalorder %s938_s28, %s987_s3 }
  0x8b   : > { %p663_p12 = scmp.lt.u32.totalorder %s661_s9, %s657_s23  ;;  %p665_p13 = scmp.lt.u32.totalorder %s657_s23, %s938_s28 }
  0x8c   : > { %p659_p11 = pnand %p658_p9, %p1000_p3 }
  0x8d   : > { %p664_p8 = por %p663_p12, %p662_p5 }
  0x8e   : > { %p660_p2 = pneg %p659_p11 }
  0x8f   : > { %p666_p6 = por %p665_p13, %p664_p8 }
  0x91   : > { %p667_p4 = pnand %p666_p6, %p660_p2 }
  0x93   : > { %670 = shalt.err (!%p667_p4)
}
  0x94   : > { %508 = dma.vmem_to_hbm [thread:$0]  (%p1000_p3), %s933_s6, 256, %s938_s28, %s343_s29  }
  0x95 PF: > { %p522_p7 = scmp.ge.s32.totalorder %s729_s17, 2  ;;  %s371_s22 = sand.u32 1, %s709_s12  }
  0x96   : > { %p1001_p10 = scmp.ne.s32.totalorder %s993_s27, 0  ;;  %s372_s4 = scalar_lea.sflag [#allocation4], %s371_s22 }
  0x98   : > { %p518_p0 = pnand %p522_p7, %p1001_p10 }
  0x9a   : > { %704 = dma.done.wait (!%p518_p0), %s372_s4, 256  }
  0x9b   : > { %706 = vsyncadd (!%p518_p0), %s372_s4, 4294967040  ;;  %s22_s17 = sadd.s32 1, %s729_s17   ;;  %s1002_s12 = smov %s713_s13 }
  0x9c   : > { %p19_p1 = scmp.ge.s32.totalorder %s22_s17, 5   ;;  %s1003_s13 = smov %s717_s14 }
  0x9d   : > { %s1004_s14 = smov %s810_s26  ;;  %s1005_s15 = smov %s725_s16 }
  0x9e   : > { %s1006_s16 = smov %s1008_s20  ;;  %21 = sbr.rel (!%p19_p1) target bundleno = 8 (0x8), region = 93 }
  0xa5   :  { %377 = vsyncpa [#allocation3], 1 }
  0xa6   :  { %379 = vsyncpa [#allocation3 + $0x1], 1 }
  0xa7   :  { %380 = vsyncpa [#allocation6], 1 }
  0xa8   :  { %382 = vsyncpa [#allocation6 + $0x1], 1 }
  0xa9   :  { %383 = vsyncpa [#allocation4], 1 }
  0xaa   :  { %385 = vsyncpa [#allocation4 + $0x1], 1 }

</bundles_post_ra>
